<compile_context>
chip_gen: v6e
topology: v6e:2x2x1
jax: 0.10.0
libtpu: 0.0.40
codegen_flags: <defaults>
</compile_context>

<pallas_src>
import math
from functools import partial

import jax
import jax.numpy as jnp
from jax.experimental import pallas as pl
from jax.experimental.pallas import tpu as pltpu


def _round_down8(n: int) -> int:
    return (n // 8) * 8


def _lane_tile(v, reps: int):
    """Concatenate `reps` copies of `v` along the lane (last) axis, O(log reps) concats."""
    if reps == 1:
        return v
    pieces = []
    chunk = v
    r = reps
    while r:
        if r & 1:
            pieces.append(chunk)
        r >>= 1
        if r:
            chunk = jnp.concatenate([chunk, chunk], axis=-1)
    return pieces[0] if len(pieces) == 1 else jnp.concatenate(pieces, axis=-1)


def _pe_add_kernel(x_ref, pe_ref, o_ref, *, batch_chunk: int):
    # x_ref / o_ref: (TS, batch_chunk * d_model)   pe_ref: (TS, d_model)
    pe_bd = _lane_tile(pe_ref[...], batch_chunk)            # (TS, batch_chunk * d_model)
    o_ref[...] = (x_ref[...] + pe_bd).astype(o_ref.dtype)   # single lane-dense store


def make_positional_encoding_table(d_model: int, max_len: int = 5000,
                                   dtype=jnp.float32) -> jnp.ndarray:
    """Deterministic parameter setup, identical to the torch __init__."""
    assert d_model % 2 == 0, "d_model must be even (same constraint as the torch module)"
    position = jnp.arange(0, max_len, dtype=jnp.float32)[:, None]             # (max_len, 1)
    div_term = jnp.exp(jnp.arange(0, d_model, 2, dtype=jnp.float32)
                       * (-math.log(10000.0) / d_model))                       # (d_model/2,)
    pe = jnp.zeros((max_len, d_model), dtype=jnp.float32)
    pe = pe.at[:, 0::2].set(jnp.sin(position * div_term))
    pe = pe.at[:, 1::2].set(jnp.cos(position * div_term))
    return pe[:, None, :].astype(dtype)                                        # (max_len, 1, d_model)


def _pick_batch_chunk(B: int, D: int, itemsize: int, target_tile_bytes: int) -> int:
    """Largest batch chunk whose minimal 8-row tile fits the budget (128-lane aligned)."""
    if 8 * B * D * itemsize <= target_tile_bytes:
        return B                                    # full width fits: no batch chunking
    for bc in range(B - 1, 0, -1):
        if B % bc:
            continue
        if (bc * D) % 128:                          # partial-width blocks must be lane-aligned
            continue
        if 8 * bc * D * itemsize <= target_tile_bytes:
            return bc
    # TODO(synk): also chunk along d_model when even a single 128-aligned batch
    # slice of 8 rows exceeds the tile budget (enormous D).
    return B


def positional_encoding_forward(x: jnp.ndarray, pe: jnp.ndarray,
                                *, target_tile_bytes: int = 4 * 1024 * 1024,
                                donate_x: bool = False) -> jnp.ndarray:
    """x: (seq_len, batch, d_model); pe: (max_len, 1, d_model)."""
    S, B, D = x.shape
    max_len = pe.shape[0]
    if S > max_len:
        raise ValueError(f"seq_len={S} exceeds the positional table max_len={max_len}")

    itemsize = jnp.dtype(x.dtype).itemsize
    x2 = x.reshape(S, B * D)                         # free contiguous view
    # Cast pe once here: halves pe DMA for bf16 x and removes per-element VPU
    # convert chains.  NOTE: output dtype is x.dtype (torch would promote).
    pe2 = pe.reshape(max_len, D).astype(x.dtype)

    # ---- tiling -------------------------------------------------------------
    bc = _pick_batch_chunk(B, D, itemsize, target_tile_bytes)
    n_b = B // bc
    col_w = bc * D
    col_bytes = col_w * itemsize

    if S < 8:
        ts = S                                       # single block equal to full dims
    else:
        ts_rows = target_tile_bytes // col_bytes
        ts = S if ts_rows >= S else max(8, _round_down8(ts_rows))

    # Make sure there are enough grid steps to split across v7x's two
    # TensorCores (and keep the DMA pipeline deep) without shrinking tiles
    # below ~512 KiB / 8 rows.
    DESIRED_TILES = 8
    MIN_SPLIT_TILE_BYTES = 512 * 1024
    n_seq = pl.cdiv(S, ts)
    if S >= 16 and n_seq * n_b < DESIRED_TILES:
        need_seq = pl.cdiv(DESIRED_TILES, n_b)
        floor_rows = max(8, _round_down8(MIN_SPLIT_TILE_BYTES // col_bytes))
        cand = max(floor_rows, _round_down8(S // need_seq))
        if cand < ts:
            ts = cand
            n_seq = pl.cdiv(S, ts)

    # pe block second-to-last dim must be divisible by 8 or span the full array.
    pe_arg = pe2 if (ts % 8 == 0) else pe2[:S]

    # ---- generation-aware VMEM budget ---------------------------------------
    tile_x = ts * col_w * itemsize
    tile_pe = ts * D * itemsize
    # double-buffered x-in + out + pe, plus the in-kernel replicated-pe temp.
    vmem_needed = 2 * (2 * tile_x + tile_pe) + tile_x
    try:
        vmem_cap = int(pltpu.get_tpu_info().vmem_capacity_bytes)
    except Exception:                                # info unavailable -> assume 128 MiB
        vmem_cap = 128 * 1024 * 1024
    soft_cap = 48 * 1024 * 1024 if vmem_cap <= 64 * 1024 * 1024 else 96 * 1024 * 1024
    hard_cap = max(soft_cap, vmem_cap - 8 * 1024 * 1024)
    want = vmem_needed + (4 << 20)                   # headroom for compiler scratch
    if want <= soft_cap:
        vmem_limit = min(max(want, 16 << 20), soft_cap)
    else:                                            # huge un-chunkable rows: allow more
        vmem_limit = min(want, hard_cap)

    # ---- pallas call ---------------------------------------------------------
    kernel = partial(_pe_add_kernel, batch_chunk=bc)
    out2 = pl.pallas_call(
        kernel,
        out_shape=jax.ShapeDtypeStruct((S, B * D), x.dtype),
        grid=(n_seq, n_b),
        in_specs=[
            pl.BlockSpec((ts, col_w), lambda s, b: (s, b)),   # x: lane-dense slab
            pl.BlockSpec((ts, D), lambda s, b: (s, 0)),       # pe: keyed on seq only
        ],
        out_specs=pl.BlockSpec((ts, col_w), lambda s, b: (s, b)),
        compiler_params=pltpu.CompilerParams(
            dimension_semantics=("parallel", "parallel"),
            vmem_limit_bytes=int(vmem_limit),
        ),
        input_output_aliases=({0: 0} if donate_x else {}),
    )(x2, pe_arg)

    return out2.reshape(S, B, D)


if __name__ == "__main__":
    seq_len, batch, d_model = 8, 2, 32
    max_len = 64  # small synthetic max_len (module default is 5000)

    key = jax.random.PRNGKey(0)
    x = jax.random.normal(key, (seq_len, batch, d_model), dtype=jnp.float32)

    pe = make_positional_encoding_table(d_model, max_len=max_len)

    out = positional_encoding_forward(x, pe)
    out = jax.block_until_ready(out)

    # Reference check against plain JAX broadcast add.
    ref = x + pe[:seq_len]
    assert out.shape == x.shape
    assert jnp.allclose(out, ref, atol=1e-6, rtol=1e-6), "mismatch vs reference"

    print("KERNEL_OK")
</pallas_src>

<mosaic_0001>
module attributes {stable_mosaic.version = 11 : i64} {
  func.func @_pe_add_kernel(%arg0: i32, %arg1: i32, %arg2: memref<8x64xf32, #tpu.memory_space<vmem>>, %arg3: memref<8x32xf32, #tpu.memory_space<vmem>>, %arg4: memref<8x64xf32, #tpu.memory_space<vmem>>) attributes {dimension_semantics = [#tpu.dimension_semantics<parallel>, #tpu.dimension_semantics<parallel>], iteration_bounds = array<i64: 1, 1>, scalar_prefetch = 0 : i64, scratch_operands = 0 : i64, tpu.core_type = #tpu.core_type<tc>, window_params = [{transform_indices = @transform_0, window_bounds = array<i64: 8, 64>}, {transform_indices = @transform_1, window_bounds = array<i64: 8, 32>}, {transform_indices = @transform_2, window_bounds = array<i64: 8, 64>}]} {
    %c0 = arith.constant 0 : index
    %c0_0 = arith.constant 0 : index
    %0 = vector.load %arg3[%c0, %c0_0] : memref<8x32xf32, #tpu.memory_space<vmem>>, vector<8x32xf32>
    %1 = tpu.concatenate %0, %0 in 1 : vector<8x32xf32>, vector<8x32xf32> -> vector<8x64xf32>
    %c0_1 = arith.constant 0 : index
    %c0_2 = arith.constant 0 : index
    %2 = vector.load %arg2[%c0_1, %c0_2] : memref<8x64xf32, #tpu.memory_space<vmem>>, vector<8x64xf32>
    %3 = arith.addf %2, %1 : vector<8x64xf32>
    %c0_3 = arith.constant 0 : index
    %c0_4 = arith.constant 0 : index
    %4 = vector.load %arg4[%c0_3, %c0_4] : memref<8x64xf32, #tpu.memory_space<vmem>>, vector<8x64xf32>
    tpu.vector_store %arg4[%c0_3, %c0_4], %3 {strides = array<i32>} : memref<8x64xf32, #tpu.memory_space<vmem>>, vector<8x64xf32>,
    return
  }
  func.func @transform_0(%arg0: i32, %arg1: i32) -> (i32, i32) {
    %c0_i32 = arith.constant 0 : i32
    return %arg0, %arg1 : i32, i32
  }
  func.func @transform_1(%arg0: i32, %arg1: i32) -> (i32, i32) {
    %c0_i32 = arith.constant 0 : i32
    %c0_i32_0 = arith.constant 0 : i32
    return %arg0, %c0_i32 : i32, i32
  }
  func.func @transform_2(%arg0: i32, %arg1: i32) -> (i32, i32) {
    %c0_i32 = arith.constant 0 : i32
    return %arg0, %arg1 : i32, i32
  }
}

</mosaic_0001>

<bundles_post_ra>
// kernel: tpu_custom_call.1
= control target key start
LH: loop header
LB: loop body
LE: loop exit
PB: predicated region body
PF: predicated region fallthrough
CT: control target
= control target key end

     0   :  { %s87_s0 = inlined_call_operand.vmem [shape: f32[8,64], index: 0, kind: input, shape index: {}]   ;;  %s88_s1 = inlined_call_operand.vmem [shape: f32[64,32], index: 1, kind: input, shape index: {}]   ;;  %s89_s2 = inlined_call_operand.hbm [shape: f32[8,64], index: 2, kind: output, shape index: {}]  }
   0x1   :  { %v12_v0 = vld [vmem:[%s88_s1] sm:$0xff] }
   0x2   :  { %7 = vsyncpa [#allocation3], 0  ;;  %s61_s11 = smov 32   ;;  %vm17_vm0 = vcmask 261120   ;;  %v19_v1 = vld [vmem:[%s87_s0] sm:$0xff]  ;;  %s62_s14 = smov [#allocation2]  }
   0x3   :  { %14 = vrot.lane.b32.xlu0 %v12_v0, %s61_s11  ;;  %s29_s15 = sshll.u32 %s62_s14, 4  ;;  %vm21_vm1 = vcmask 523264   ;;  %s30_s15 = int_to_ptr.vmem [resolvable:$true] %s29_s15 }
   0x4   :  { %s39_s16 = scalar_lea.vmem %s30_s15, 128  ;;  %p44_p1 = scmp.lt.s32.totalorder %s30_s15, %s30_s15 }
   0x5   :  { %p40_p0 = scmp.ne.s32.totalorder %s30_s15, %s39_s16  ;;  %p45_p2 = scmp.lt.s32.totalorder %s39_s16, %s39_s16 }
   0x7   :  { %p46_p3 = por %p45_p2, %p44_p1 }
   0x9   :  { %p47_p4 = pnand %p46_p3, %p40_p0 }
  0x75   :  { %v15_v2 = vpop.permute.xlu0 %14 }
  0x76   :  { %v18_v3 = vsel %vm17_vm0, %v12_v0, %v15_v2 }
  0x77   :  { %v20_v4 = vadd.f32 %v19_v1, %v18_v3 }
  0x79   :  { %22 = vst.msk [vmem:[#allocation2] sm:$0xff] %vm21_vm1, %v20_v4 }
  0x7a   :  { %50 = shalt.err (!%p47_p4)
}
  0x7b   :  { %32 = dma.vmem_to_hbm [thread:$0]  %s30_s15, 128, %s89_s2, [#allocation3]  }
  0x7c   :  { %59 = dma.done.wait [#allocation3], 128  }
  0x7d   :  { %60 = vsyncadd [#allocation3], 4294967168 }
  0x7e   :  { %36 = vsyncpa [#allocation3], 1 }

</bundles_post_ra>
